<compile_context>
chip_gen: v7x
topology: tpu7x:2x2x1
jax: 0.10.0
libtpu: 0.0.40
codegen_flags: <defaults>
</compile_context>

<pallas_src>
import functools
import math

import jax
import jax.numpy as jnp
from jax.experimental import pallas as pl
from jax.experimental.pallas import tpu as pltpu

# ---- model hyper-parameters (small, consistent with the module's __init__) ----
NUM_HEADS = 2      # num_heads
KEY_DIM   = 16     # layer_size (per-head key/value dim)
D_MODEL   = 32     # feed_forward_size (model width)
HKD       = NUM_HEADS * KEY_DIM
EPS       = 1e-5   # nn.LayerNorm default eps


def _layer_norm(x, gamma, beta):
    mu = jnp.mean(x, axis=-1, keepdims=True)
    var = jnp.mean((x - mu) ** 2, axis=-1, keepdims=True)
    return (x - mu) * jax.lax.rsqrt(var + EPS) * gamma + beta


def transformer_layer_kernel(x_ref, w_ref, vec_ref, out_ref, *, batch, seq):
    D = D_MODEL
    BS = batch * seq
    R = NUM_HEADS * BS                 # stacked attention rows (head-major)
    W3 = 3 * HKD

    x = x_ref[...]                     # (BS, D)
    w = w_ref[...]                     # (rows, W3 + 2D + R) weight slab
    vec = vec_ref[...]                 # (8, W3) vector slab

    # ---- static slices out of the packed slabs ----
    wqkv  = w[0:D,   0:W3]                       # (D, 3*HKD) fused Q|K|V
    wo    = w[0:HKD, W3:W3 + D]                  # (HKD, D)
    wff   = w[0:D,   W3 + D:W3 + 2 * D]          # (D, D)
    maskb = w[0:R,   W3 + 2 * D:W3 + 2 * D + R]  # (R, R) block-diag additive mask

    g1   = vec[0:1, :D]
    b1   = vec[1:2, :D]
    g2   = vec[2:3, :D]
    b2   = vec[3:4, :D]
    bo   = vec[4:5, :D]
    bff  = vec[5:6, :D]
    bqkv = vec[6:7, :]                 # (1, 3*HKD)

    # ---- norm_1 + fused Q|K|V projection (single MXU matmul) ----
    x1 = _layer_norm(x, g1, b1)
    qkv = jnp.dot(x1, wqkv, preferred_element_type=jnp.float32) + bqkv   # (BS, 3*HKD)

    # ---- stack heads along rows: (NUM_HEADS*BS, KD) ----
    q_s = jnp.concatenate(
        [qkv[:, h * KEY_DIM:(h + 1) * KEY_DIM] for h in range(NUM_HEADS)], axis=0)
    k_s = jnp.concatenate(
        [qkv[:, HKD + h * KEY_DIM:HKD + (h + 1) * KEY_DIM]
         for h in range(NUM_HEADS)], axis=0)
    v_s = jnp.concatenate(
        [qkv[:, 2 * HKD + h * KEY_DIM:2 * HKD + (h + 1) * KEY_DIM]
         for h in range(NUM_HEADS)], axis=0)

    # ---- block-diagonal attention: one score matmul, one softmax, one PV matmul ----
    scale = 1.0 / math.sqrt(KEY_DIM)
    s = jax.lax.dot_general(q_s, k_s, (((1,), (1,)), ((), ())),
                            preferred_element_type=jnp.float32) * scale  # (R, R)
    s = s + maskb                                  # causal in-block, -1e9 off-block
    s = s - jnp.max(s, axis=-1, keepdims=True)
    p = jnp.exp(s)
    denom = jnp.sum(p, axis=-1, keepdims=True)     # (R, 1)
    o = jnp.dot(p, v_s, preferred_element_type=jnp.float32)              # (R, KD)

    # normalize the small (R, KD) output; approx reciprocal (EUP) + one Newton step
    r = pl.reciprocal(denom, approx=True)
    r = r * (2.0 - denom * r)
    o = o * r

    # ---- per-head partial output projection (no lane-dim concat) ----
    proj = None
    for h in range(NUM_HEADS):
        contrib = jnp.dot(o[h * BS:(h + 1) * BS, :],
                          wo[h * KEY_DIM:(h + 1) * KEY_DIM, :],
                          preferred_element_type=jnp.float32)
        proj = contrib if proj is None else proj + contrib

    xa = x + proj + bo                 # attn dropout + dropout_1: identity at inference

    # ---- norm_2 + feed forward + residual ----
    y = _layer_norm(xa, g2, b2)
    ff = jnp.dot(y, wff, preferred_element_type=jnp.float32) + bff
    out_ref[...] = xa + ff


def init_transformer_layer(params, mask, batch, seq):
    """One-time packing of weights + mask into the kernel's two slab inputs.

    Call once and reuse the result for every forward call, so no concats,
    pads or `where` run on the per-call path.
    """
    D = D_MODEL
    BS = batch * seq
    R = NUM_HEADS * BS
    W3 = 3 * HKD

    f32 = lambda a: jnp.asarray(a, jnp.float32)

    wqkv = jnp.concatenate([f32(params["wq"]), f32(params["wk"]), f32(params["wv"])],
                           axis=1)                                   # (D, 3*HKD)
    bqkv = jnp.concatenate([f32(params["bq"]), f32(params["bk"]), f32(params["bv"])],
                           axis=1)                                   # (1, 3*HKD)

    # Block-diagonal additive mask over stacked (head, batch) blocks:
    # causal bias inside each (S,S) block, -1e9 everywhere off-block.
    bias = jnp.where(f32(mask) == 0, -1e9, 0.0)                      # (S, S)
    nblk = NUM_HEADS * batch
    maskb = jnp.kron(jnp.eye(nblk, dtype=jnp.float32), bias + 1e9) - 1e9   # (R, R)

    rows = max(D, HKD, R)
    cols = W3 + 2 * D + R
    wslab = jnp.zeros((rows, cols), jnp.float32)
    wslab = wslab.at[0:D,   0:W3].set(wqkv)
    wslab = wslab.at[0:HKD, W3:W3 + D].set(f32(params["wo"]))
    wslab = wslab.at[0:D,   W3 + D:W3 + 2 * D].set(f32(params["wff"]))
    wslab = wslab.at[0:R,   W3 + 2 * D:W3 + 2 * D + R].set(maskb)

    def row(v):
        v = f32(v)
        return jnp.pad(v, ((0, 0), (0, W3 - v.shape[1])))

    vslab = jnp.concatenate([
        row(params["g1"]), row(params["b1"]),
        row(params["g2"]), row(params["b2"]),
        row(params["bo"]), row(params["bff"]),
        bqkv,
        jnp.zeros((1, W3), jnp.float32),
    ], axis=0)                                                       # (8, 3*HKD)

    return {"wslab": jax.device_put(wslab), "vslab": jax.device_put(vslab),
            "batch": batch, "seq": seq}


@functools.partial(jax.jit, static_argnames=("batch", "seq"))
def _forward(x, wslab, vslab, batch, seq):
    kernel = functools.partial(transformer_layer_kernel, batch=batch, seq=seq)
    vmem = lambda: pl.BlockSpec(memory_space=pltpu.MemorySpace.VMEM)
    out2d = pl.pallas_call(
        kernel,
        out_shape=jax.ShapeDtypeStruct((batch * seq, D_MODEL), jnp.float32),
        in_specs=[vmem(), vmem(), vmem()],
        out_specs=vmem(),
    )(x.reshape(batch * seq, D_MODEL), wslab, vslab)
    return out2d.reshape(batch, seq, D_MODEL)


def transformer_layer(x, packed):
    return _forward(x, packed["wslab"], packed["vslab"],
                    batch=packed["batch"], seq=packed["seq"])


# ------------------------- pure-JAX reference -------------------------
def transformer_layer_ref(x, mask, p):
    def ln(z, g, b):
        mu = z.mean(-1, keepdims=True)
        var = ((z - mu) ** 2).mean(-1, keepdims=True)
        return (z - mu) / jnp.sqrt(var + EPS) * g + b

    B, S, D = x.shape
    x1 = ln(x, p["g1"], p["b1"])
    q = (x1 @ p["wq"] + p["bq"]).reshape(B, S, NUM_HEADS, KEY_DIM).transpose(0, 2, 1, 3)
    k = (x1 @ p["wk"] + p["bk"]).reshape(B, S, NUM_HEADS, KEY_DIM).transpose(0, 2, 1, 3)
    v = (x1 @ p["wv"] + p["bv"]).reshape(B, S, NUM_HEADS, KEY_DIM).transpose(0, 2, 1, 3)
    scores = jnp.einsum("bhqd,bhkd->bhqk", q, k) / math.sqrt(KEY_DIM)
    scores = jnp.where(mask[None, None] == 0, -1e9, scores)
    scores = jax.nn.softmax(scores, axis=-1)
    attn = jnp.einsum("bhqk,bhkd->bhqd", scores, v)
    concat = attn.transpose(0, 2, 1, 3).reshape(B, S, NUM_HEADS * KEY_DIM)
    attn_out = concat @ p["wo"] + p["bo"]
    x = x + attn_out
    y = ln(x, p["g2"], p["b2"])
    return x + (y @ p["wff"] + p["bff"])


if __name__ == "__main__":
    B, S, D = 2, 8, D_MODEL

    key = jax.random.PRNGKey(0)
    ks = jax.random.split(key, 16)

    def w(k, shape, scale=0.1):
        return (scale * jax.random.normal(k, shape)).astype(jnp.float32)

    params = {
        # LayerNorm 1 / 2 (gamma ~ 1, beta small), kept (1, D) for broadcasting.
        "g1": (1.0 + w(ks[0], (1, D), 0.05)), "b1": w(ks[1], (1, D), 0.05),
        "g2": (1.0 + w(ks[2], (1, D), 0.05)), "b2": w(ks[3], (1, D), 0.05),
        # attention projections (stored as (in, out); y = x @ W + b, same math as nn.Linear)
        "wq": w(ks[4], (D, HKD)), "bq": w(ks[5], (1, HKD), 0.05),
        "wk": w(ks[6], (D, HKD)), "bk": w(ks[7], (1, HKD), 0.05),
        "wv": w(ks[8], (D, HKD)), "bv": w(ks[9], (1, HKD), 0.05),
        "wo": w(ks[10], (HKD, D)), "bo": w(ks[11], (1, D), 0.05),
        # feed-forward
        "wff": w(ks[12], (D, D)), "bff": w(ks[13], (1, D), 0.05),
    }

    x = jax.random.normal(ks[14], (B, S, D), dtype=jnp.float32)
    mask = jnp.tril(jnp.ones((S, S), dtype=jnp.float32))  # causal mask

    packed = init_transformer_layer(params, mask, B, S)   # one-time packing
    out = transformer_layer(x, packed)
    out = jax.block_until_ready(out)

    ref = transformer_layer_ref(x, mask, params)
    assert out.shape == (B, S, D)
    assert jnp.allclose(out, ref, rtol=5e-4, atol=5e-4), \
        f"mismatch, max err {jnp.max(jnp.abs(out - ref))}"

    print("KERNEL_OK")
</pallas_src>

<mosaic_0001>
module attributes {stable_mosaic.version = 11 : i64} {
  func.func @transformer_layer_kernel(%arg0: memref<16x32xf32, #tpu.memory_space<vmem>>, %arg1: memref<32x192xf32, #tpu.memory_space<vmem>>, %arg2: memref<8x96xf32, #tpu.memory_space<vmem>>, %arg3: memref<16x32xf32, #tpu.memory_space<vmem>>) attributes {dimension_semantics = [], scalar_prefetch = 0 : i64, scratch_operands = 0 : i64, tpu.core_type = #tpu.core_type<tc>} {
    %c0 = arith.constant 0 : index
    %c0_0 = arith.constant 0 : index
    %0 = vector.load %arg0[%c0, %c0_0] : memref<16x32xf32, #tpu.memory_space<vmem>>, vector<16x32xf32>
    %c0_1 = arith.constant 0 : index
    %c0_2 = arith.constant 0 : index
    %1 = vector.load %arg1[%c0_1, %c0_2] : memref<32x192xf32, #tpu.memory_space<vmem>>, vector<32x192xf32>
    %c0_3 = arith.constant 0 : index
    %c0_4 = arith.constant 0 : index
    %2 = vector.load %arg2[%c0_3, %c0_4] : memref<8x96xf32, #tpu.memory_space<vmem>>, vector<8x96xf32>
    %3 = vector.extract_strided_slice %1 {offsets = [0, 0], sizes = [32, 96], strides = [1, 1]} : vector<32x192xf32> to vector<32x96xf32>
    %4 = vector.extract_strided_slice %1 {offsets = [0, 96], sizes = [32, 32], strides = [1, 1]} : vector<32x192xf32> to vector<32x32xf32>
    %5 = vector.extract_strided_slice %1 {offsets = [0, 128], sizes = [32, 32], strides = [1, 1]} : vector<32x192xf32> to vector<32x32xf32>
    %6 = vector.extract_strided_slice %1 {offsets = [0, 160], sizes = [32, 32], strides = [1, 1]} : vector<32x192xf32> to vector<32x32xf32>
    %7 = vector.extract_strided_slice %2 {offsets = [0, 0], sizes = [1, 32], strides = [1, 1]} : vector<8x96xf32> to vector<1x32xf32>
    %8 = vector.extract_strided_slice %2 {offsets = [1, 0], sizes = [1, 32], strides = [1, 1]} : vector<8x96xf32> to vector<1x32xf32>
    %9 = vector.extract_strided_slice %2 {offsets = [2, 0], sizes = [1, 32], strides = [1, 1]} : vector<8x96xf32> to vector<1x32xf32>
    %10 = vector.extract_strided_slice %2 {offsets = [3, 0], sizes = [1, 32], strides = [1, 1]} : vector<8x96xf32> to vector<1x32xf32>
    %11 = vector.extract_strided_slice %2 {offsets = [4, 0], sizes = [1, 32], strides = [1, 1]} : vector<8x96xf32> to vector<1x32xf32>
    %12 = vector.extract_strided_slice %2 {offsets = [5, 0], sizes = [1, 32], strides = [1, 1]} : vector<8x96xf32> to vector<1x32xf32>
    %13 = vector.extract_strided_slice %2 {offsets = [6, 0], sizes = [1, 96], strides = [1, 1]} : vector<8x96xf32> to vector<1x96xf32>
    %cst = arith.constant dense<0.000000e+00> : vector<16xf32>
    %14 = vector.multi_reduction <add>, %0, %cst [1] : vector<16x32xf32> to vector<16xf32>
    %15 = vector.shape_cast %14 : vector<16xf32> to vector<16x1xf32>
    %cst_5 = arith.constant 3.200000e+01 : f32
    %16 = vector.broadcast %cst_5 : f32 to vector<16x1xf32>
    %17 = arith.divf %15, %16 : vector<16x1xf32>
    %18 = vector.broadcast %17 : vector<16x1xf32> to vector<16x32xf32>
    %19 = arith.subf %0, %18 : vector<16x32xf32>
    %20 = arith.mulf %19, %19 : vector<16x32xf32>
    %cst_6 = arith.constant dense<0.000000e+00> : vector<16xf32>
    %21 = vector.multi_reduction <add>, %20, %cst_6 [1] : vector<16x32xf32> to vector<16xf32>
    %22 = vector.shape_cast %21 : vector<16xf32> to vector<16x1xf32>
    %cst_7 = arith.constant 3.200000e+01 : f32
    %23 = vector.broadcast %cst_7 : f32 to vector<16x1xf32>
    %24 = arith.divf %22, %23 : vector<16x1xf32>
    %25 = vector.broadcast %17 : vector<16x1xf32> to vector<16x32xf32>
    %26 = arith.subf %0, %25 : vector<16x32xf32>
    %cst_8 = arith.constant 9.99999974E-6 : f32
    %27 = vector.broadcast %cst_8 : f32 to vector<16x1xf32>
    %28 = arith.addf %24, %27 : vector<16x1xf32>
    %29 = math.rsqrt %28 : vector<16x1xf32>
    %30 = vector.broadcast %29 : vector<16x1xf32> to vector<16x32xf32>
    %31 = arith.mulf %26, %30 : vector<16x32xf32>
    %32 = vector.broadcast %7 : vector<1x32xf32> to vector<16x32xf32>
    %33 = arith.mulf %31, %32 : vector<16x32xf32>
    %34 = vector.broadcast %8 : vector<1x32xf32> to vector<16x32xf32>
    %35 = arith.addf %33, %34 : vector<16x32xf32>
    %cst_9 = arith.constant dense<0.000000e+00> : vector<16x96xf32>
    %36 = tpu.matmul %35, %3, %cst_9 {dimension_numbers = #tpu.dot_dimension_numbers<[1], [0], [0], [1], [0, 0, 1, 1], [], []>} : vector<16x32xf32>, vector<32x96xf32>, vector<16x96xf32> -> vector<16x96xf32>
    %37 = vector.broadcast %13 : vector<1x96xf32> to vector<16x96xf32>
    %38 = arith.addf %36, %37 : vector<16x96xf32>
    %39 = vector.extract_strided_slice %38 {offsets = [0, 0], sizes = [16, 16], strides = [1, 1]} : vector<16x96xf32> to vector<16x16xf32>
    %40 = vector.extract_strided_slice %38 {offsets = [0, 16], sizes = [16, 16], strides = [1, 1]} : vector<16x96xf32> to vector<16x16xf32>
    %41 = tpu.concatenate %39, %40 in 0 : vector<16x16xf32>, vector<16x16xf32> -> vector<32x16xf32>
    %42 = vector.extract_strided_slice %38 {offsets = [0, 32], sizes = [16, 16], strides = [1, 1]} : vector<16x96xf32> to vector<16x16xf32>
    %43 = vector.extract_strided_slice %38 {offsets = [0, 48], sizes = [16, 16], strides = [1, 1]} : vector<16x96xf32> to vector<16x16xf32>
    %44 = tpu.concatenate %42, %43 in 0 : vector<16x16xf32>, vector<16x16xf32> -> vector<32x16xf32>
    %45 = vector.extract_strided_slice %38 {offsets = [0, 64], sizes = [16, 16], strides = [1, 1]} : vector<16x96xf32> to vector<16x16xf32>
    %46 = vector.extract_strided_slice %38 {offsets = [0, 80], sizes = [16, 16], strides = [1, 1]} : vector<16x96xf32> to vector<16x16xf32>
    %47 = tpu.concatenate %45, %46 in 0 : vector<16x16xf32>, vector<16x16xf32> -> vector<32x16xf32>
    %cst_10 = arith.constant dense<0.000000e+00> : vector<32x32xf32>
    %48 = tpu.matmul %41, %44, %cst_10 {dimension_numbers = #tpu.dot_dimension_numbers<[1], [1], [0], [0], [0, 0, 1, 0], [], []>} : vector<32x16xf32>, vector<32x16xf32>, vector<32x32xf32> -> vector<32x32xf32>
    %cst_11 = arith.constant 2.500000e-01 : f32
    %49 = vector.broadcast %cst_11 : f32 to vector<32x32xf32>
    %50 = arith.mulf %48, %49 : vector<32x32xf32>
    %51 = arith.addf %50, %6 : vector<32x32xf32>
    %cst_12 = arith.constant dense<0xFF800000> : vector<32xf32>
    %52 = vector.multi_reduction <maximumf>, %51, %cst_12 [1] : vector<32x32xf32> to vector<32xf32>
    %53 = vector.shape_cast %52 : vector<32xf32> to vector<32x1xf32>
    %54 = vector.broadcast %53 : vector<32x1xf32> to vector<32x32xf32>
    %55 = arith.subf %51, %54 : vector<32x32xf32>
    %56 = math.exp %55 : vector<32x32xf32>
    %cst_13 = arith.constant dense<0.000000e+00> : vector<32xf32>
    %57 = vector.multi_reduction <add>, %56, %cst_13 [1] : vector<32x32xf32> to vector<32xf32>
    %58 = vector.shape_cast %57 : vector<32xf32> to vector<32x1xf32>
    %cst_14 = arith.constant dense<0.000000e+00> : vector<32x16xf32>
    %59 = tpu.matmul %56, %47, %cst_14 {dimension_numbers = #tpu.dot_dimension_numbers<[1], [0], [0], [1], [0, 0, 1, 1], [], []>} : vector<32x32xf32>, vector<32x16xf32>, vector<32x16xf32> -> vector<32x16xf32>
    %60 = tpu.reciprocal %58 {approx = true} : vector<32x1xf32> -> vector<32x1xf32>
    %61 = arith.mulf %58, %60 : vector<32x1xf32>
    %cst_15 = arith.constant 2.000000e+00 : f32
    %62 = vector.broadcast %cst_15 : f32 to vector<32x1xf32>
    %63 = arith.subf %62, %61 : vector<32x1xf32>
    %64 = arith.mulf %60, %63 : vector<32x1xf32>
    %65 = vector.broadcast %64 : vector<32x1xf32> to vector<32x16xf32>
    %66 = arith.mulf %59, %65 : vector<32x16xf32>
    %67 = vector.extract_strided_slice %66 {offsets = [0, 0], sizes = [16, 16], strides = [1, 1]} : vector<32x16xf32> to vector<16x16xf32>
    %68 = vector.extract_strided_slice %4 {offsets = [0, 0], sizes = [16, 32], strides = [1, 1]} : vector<32x32xf32> to vector<16x32xf32>
    %cst_16 = arith.constant dense<0.000000e+00> : vector<16x32xf32>
    %69 = tpu.matmul %67, %68, %cst_16 {dimension_numbers = #tpu.dot_dimension_numbers<[1], [0], [0], [1], [0, 0, 1, 1], [], []>} : vector<16x16xf32>, vector<16x32xf32>, vector<16x32xf32> -> vector<16x32xf32>
    %70 = vector.extract_strided_slice %66 {offsets = [16, 0], sizes = [16, 16], strides = [1, 1]} : vector<32x16xf32> to vector<16x16xf32>
    %71 = vector.extract_strided_slice %4 {offsets = [16, 0], sizes = [16, 32], strides = [1, 1]} : vector<32x32xf32> to vector<16x32xf32>
    %cst_17 = arith.constant dense<0.000000e+00> : vector<16x32xf32>
    %72 = tpu.matmul %70, %71, %cst_17 {dimension_numbers = #tpu.dot_dimension_numbers<[1], [0], [0], [1], [0, 0, 1, 1], [], []>} : vector<16x16xf32>, vector<16x32xf32>, vector<16x32xf32> -> vector<16x32xf32>
    %73 = arith.addf %69, %72 : vector<16x32xf32>
    %74 = arith.addf %0, %73 : vector<16x32xf32>
    %75 = vector.broadcast %11 : vector<1x32xf32> to vector<16x32xf32>
    %76 = arith.addf %74, %75 : vector<16x32xf32>
    %cst_18 = arith.constant dense<0.000000e+00> : vector<16xf32>
    %77 = vector.multi_reduction <add>, %76, %cst_18 [1] : vector<16x32xf32> to vector<16xf32>
    %78 = vector.shape_cast %77 : vector<16xf32> to vector<16x1xf32>
    %cst_19 = arith.constant 3.200000e+01 : f32
    %79 = vector.broadcast %cst_19 : f32 to vector<16x1xf32>
    %80 = arith.divf %78, %79 : vector<16x1xf32>
    %81 = vector.broadcast %80 : vector<16x1xf32> to vector<16x32xf32>
    %82 = arith.subf %76, %81 : vector<16x32xf32>
    %83 = arith.mulf %82, %82 : vector<16x32xf32>
    %cst_20 = arith.constant dense<0.000000e+00> : vector<16xf32>
    %84 = vector.multi_reduction <add>, %83, %cst_20 [1] : vector<16x32xf32> to vector<16xf32>
    %85 = vector.shape_cast %84 : vector<16xf32> to vector<16x1xf32>
    %cst_21 = arith.constant 3.200000e+01 : f32
    %86 = vector.broadcast %cst_21 : f32 to vector<16x1xf32>
    %87 = arith.divf %85, %86 : vector<16x1xf32>
    %88 = vector.broadcast %80 : vector<16x1xf32> to vector<16x32xf32>
    %89 = arith.subf %76, %88 : vector<16x32xf32>
    %cst_22 = arith.constant 9.99999974E-6 : f32
    %90 = vector.broadcast %cst_22 : f32 to vector<16x1xf32>
    %91 = arith.addf %87, %90 : vector<16x1xf32>
    %92 = math.rsqrt %91 : vector<16x1xf32>
    %93 = vector.broadcast %92 : vector<16x1xf32> to vector<16x32xf32>
    %94 = arith.mulf %89, %93 : vector<16x32xf32>
    %95 = vector.broadcast %9 : vector<1x32xf32> to vector<16x32xf32>
    %96 = arith.mulf %94, %95 : vector<16x32xf32>
    %97 = vector.broadcast %10 : vector<1x32xf32> to vector<16x32xf32>
    %98 = arith.addf %96, %97 : vector<16x32xf32>
    %cst_23 = arith.constant dense<0.000000e+00> : vector<16x32xf32>
    %99 = tpu.matmul %98, %5, %cst_23 {dimension_numbers = #tpu.dot_dimension_numbers<[1], [0], [0], [1], [0, 0, 1, 1], [], []>} : vector<16x32xf32>, vector<32x32xf32>, vector<16x32xf32> -> vector<16x32xf32>
    %100 = vector.broadcast %12 : vector<1x32xf32> to vector<16x32xf32>
    %101 = arith.addf %99, %100 : vector<16x32xf32>
    %102 = arith.addf %76, %101 : vector<16x32xf32>
    %c0_24 = arith.constant 0 : index
    %c0_25 = arith.constant 0 : index
    %103 = vector.load %arg3[%c0_24, %c0_25] : memref<16x32xf32, #tpu.memory_space<vmem>>, vector<16x32xf32>
    tpu.vector_store %arg3[%c0_24, %c0_25], %102 {strides = array<i32>} : memref<16x32xf32, #tpu.memory_space<vmem>>, vector<16x32xf32>,
    return
  }
}

</mosaic_0001>

<bundles_post_ra>
// kernel: _forward.1
= control target key start
LH: loop header
LB: loop body
LE: loop exit
PB: predicated region body
PF: predicated region fallthrough
CT: control target
= control target key end

     0   :  { %8 = vsyncpa [#allocation3], 0  ;;  %s1289_s0 = inlined_call_operand.hbm [shape: f32[16,32], index: 0, kind: input, shape index: {}]   ;;  %s1290_s1 = inlined_call_operand.hbm [shape: f32[32,192], index: 1, kind: input, shape index: {}]   ;;  %s1291_s2 = inlined_call_operand.vmem [shape: f32[8,96], index: 2, kind: input, shape index: {}]   ;;  %s1292_s3 = inlined_call_operand.hbm [shape: f32[16,32], index: 3, kind: output, shape index: {}]  }
   0x1   :  { %9 = vsyncpa [#allocation6], 0 }
   0x2   :  { %10 = vsyncpa [#allocation4], 0  ;;  %s1118_s12 = smov [#allocation2]   ;;  %s1046_s16 = scalar_lea.hbm %s1289_s0, 256 }
   0x3   :  { %s16_s13 = sshll.u32 %s1118_s12, 4  ;;  %p1047_p0 = scmp.ne.s32.totalorder %s1289_s0, %s1046_s16  ;;  %s17_s13 = int_to_ptr.vmem [resolvable:$true] %s16_s13 }
   0x4   :  { %p1050_p1 = scmp.lt.u32.totalorder %s1046_s16, %s1289_s0 }
   0x6   :  { %p1052_p2 = pnand %p1050_p1, %p1047_p0 }
   0x8   :  { %1055 = shalt.err (!%p1052_p2)
}
   0x9   :  { %s1056_s21 = scalar_lea.vmem %s17_s13, 256  ;;  %p1061_p4 = scmp.lt.s32.totalorder %s17_s13, %s17_s13 }
   0xa   :  { %p1057_p3 = scmp.ne.s32.totalorder %s17_s13, %s1056_s21  ;;  %p1062_p5 = scmp.lt.s32.totalorder %s1056_s21, %s1056_s21 }
   0xc   :  { %p1063_p6 = por %p1062_p5, %p1061_p4 }
   0xe   :  { %p1064_p7 = pnand %p1063_p6, %p1057_p3 }
  0x10   :  { %1067 = shalt.err (!%p1064_p7)
}
  0x11   :  { %s1119_s22 = smov 128   ;;  %s1120_s23 = smov 8  }
  0x12   :  { %22 = dma.hbm_to_vmem [thread:$0]  %s1289_s0, 256, %s17_s13, [#allocation3], %s1119_s22, %s1119_s22, %s1120_s23  }
  0x13   :  { %s1121_s26 = smov [#allocation5]   ;;  %s1068_s30 = scalar_lea.hbm %s1290_s1, 1024 }
  0x14   :  { %s28_s27 = sshll.u32 %s1121_s26, 4  ;;  %p1069_p8 = scmp.ne.s32.totalorder %s1290_s1, %s1068_s30  ;;  %s29_s27 = int_to_ptr.vmem [resolvable:$true] %s28_s27 }
  0x15   :  { %p1072_p9 = scmp.lt.u32.totalorder %s1068_s30, %s1290_s1 }
  0x17   :  { %p1074_p10 = pnand %p1072_p9, %p1069_p8 }
  0x19   :  { %1077 = shalt.err (!%p1074_p10)
}
  0x1a   :  { %s1078_s8 = scalar_lea.vmem %s29_s27, 1024  ;;  %p1083_p12 = scmp.lt.s32.totalorder %s29_s27, %s29_s27 }
  0x1b   :  { %p1079_p11 = scmp.ne.s32.totalorder %s29_s27, %s1078_s8  ;;  %p1084_p13 = scmp.lt.s32.totalorder %s1078_s8, %s1078_s8 }
  0x1d   :  { %p1085_p0 = por %p1084_p13, %p1083_p12 }
  0x1f   :  { %p1086_p1 = pnand %p1085_p0, %p1079_p11 }
  0x21   :  { %1089 = shalt.err (!%p1086_p1)
}
  0x22   :  { %s1122_s0 = smov 256   ;;  %s1123_s9 = smov 16  }
  0x23   :  { %34 = dma.hbm_to_vmem [thread:$0]  %s1290_s1, 1024, %s29_s27, [#allocation6], %s1122_s0, %s1122_s0, %s1123_s9  }
  0x24   :  { %1112 = dma.done.wait [#allocation3], 256  }
  0x25   :  { %1113 = vsyncadd [#allocation3], 4294967040 }
  0x26   :  { %1114 = dma.done.wait [#allocation6], 1024  }
  0x27   :  { %1115 = vsyncadd [#allocation6], 4294966272  ;;  %vm54_vm0 = vcmask 261120   ;;  %v1176_v0 = vld [vmem:[#allocation2] sm:$0xff]  ;;  %v1178_v1 = vld [vmem:[#allocation2 + $0x8] sm:$0xff]  ;;  %v82_v23 = vlaneseq  ;;  %vm193_vm1 = vcmask 130048  }
  0x28   :  { %v55_v2 = vsel %vm54_vm0, %v1176_v0, 0.0  ;;  %v58_v3 = vsel %vm54_vm0, %v1178_v1, 0.0  ;;  %v1188_v14 = vld [vmem:[#allocation5] sm:$0xff]  ;;  %v1190_v15 = vld [vmem:[#allocation5 + $0x10] sm:$0xff]  ;;  %s1125_s13 = smov 96   ;;  %vm1220_vm2 = vmpackc.low %vm193_vm1, %vm193_vm1  ;;  %s1126_s14 = smov 64  }
  0x29   :  { %56 = vadd.xlane.f32.xlu0 %v55_v2  ;;  %v1192_v16 = vld [vmem:[#allocation5 + $0x20] sm:$0xff]  ;;  %v1017_v17 = vpack.i.bf16 %v1190_v15, %v1188_v14  ;;  %v935_v18 = vpack.c.bf16 %v1190_v15, %v1188_v14  ;;  %v1198_v19 = vld [vmem:[#allocation5 + $0x30] sm:$0xff]  ;;  %v1202_v27 = vshrl.u32 %v82_v23, 7  ;;  %v48_v57 = vld [vmem:[#allocation5 + $0x18] sm:$0xff]  ;;  %s1127_s15 = smov 32   ;;  %s1128_s16 = smov [#allocation7]  }
  0x2a   :  { %v939_v20 = vpack.c.bf16 %v1198_v19, %v1192_v16  ;;  %v1208_v30 = vld [vmem:[%s1291_s2] sm:$0xff]  ;;  %s1124_s2 = smov 112   ;;  %v46_v58 = vld [vmem:[#allocation5 + $0x8] sm:$0xff]  ;;  %v52_v60 = vld [vmem:[#allocation5 + $0x38] sm:$0xff]  ;;  %s802_s17 = sshll.u32 %s1128_s16, 4  ;;  %s803_s17 = int_to_ptr.vmem [resolvable:$true] %s802_s17 }
  0x2b   :  { %936 = vmatprep.subr.bf16.mxu0 %v935_v18  ;;  %v84_v29 = vsub.s32 0, %v1202_v27  ;;  %v90_v31 = vsub.s32 1, %v1202_v27  ;;  %v96_v42 = vsub.s32 6, %v1202_v27  ;;  %v971_v59 = vpack.c.bf16 %v48_v57, %v46_v58  ;;  %v50_v61 = vld [vmem:[#allocation5 + $0x28] sm:$0xff]  ;;  %s1090_s18 = scalar_lea.vmem %s803_s17, 256  ;;  %p1095_p3 = scmp.lt.s32.totalorder %s803_s17, %s803_s17 }
  0x2c   :  { %938 = vmatpush3.bf16.msra.mxu0 %v935_v18  ;;  %v975_v62 = vpack.c.bf16 %v52_v60, %v50_v61  ;;  %p1091_p2 = scmp.ne.s32.totalorder %s803_s17, %s1090_s18  ;;  %p1096_p4 = scmp.lt.s32.totalorder %s1090_s18, %s1090_s18 }
  0x2d   :  { %59 = vadd.xlane.f32.xlu0 %v58_v3  ;;  %940 = vmatprep.subr.bf16.mxu0 %v939_v20  ;;  %v85_v32 = vrot.slane %v1208_v30, %v84_v29  ;;  %v91_v35 = vrot.slane %v1208_v30, %v90_v31  ;;  %v97_v43 = vrot.slane %v1208_v30, %v96_v42 }
  0x2e   :  { %p1097_p5 = por %p1096_p4, %p1095_p3 }
  0x30   :  { %942 = vmatpush3.bf16.msra.mxu0 %v939_v20  ;;  %p1098_p6 = pnand %p1097_p5, %p1091_p2 }
  0xb6   :  { %v57_v4 = vpop.xlane.xlu0 %56 }
  0xb7   :  { %v62_v5 = vmul.f32 0.03125, %v57_v4 }
  0xb9   :  { %v64_v6 = vsub.f32 %v1176_v0, %v62_v5 }
  0xba   :  { %v60_v7 = vpop.xlane.xlu0 %59 }
  0xbb   :  { %v63_v8 = vmul.f32 0.03125, %v60_v7  ;;  %v66_v9 = vmul.f32 %v64_v6, %v64_v6 }
  0xbd   :  { %v65_v10 = vsub.f32 %v1178_v1, %v63_v8  ;;  %v68_v11 = vsel %vm54_vm0, %v66_v9, 0.0 }
  0xbe   :  { %69 = vadd.xlane.f32.xlu1 %v68_v11 }
  0xbf   :  { %v67_v12 = vmul.f32 %v65_v10, %v65_v10 }
  0xc1   :  { %v71_v13 = vsel %vm54_vm0, %v67_v12, 0.0 }
  0xc2   :  { %72 = vadd.xlane.f32.xlu1 %v71_v13 }
 0x14b   :  { %v70_v21 = vpop.xlane.xlu1 %69 }
 0x14c   :  { %v74_v22 = vmul.f32 0.03125, %v70_v21 }
 0x14e   :  { %v76_v24 = vadd.f32 1e-05, %v74_v22 }
 0x14f   :  { %v73_v25 = vpop.xlane.xlu1 %72 }
 0x150   :  { %1022 = vrsqrt.f32 %v76_v24  ;;  %v75_v26 = vmul.f32 0.03125, %v73_v25 }
 0x152   :  { %v77_v28 = vadd.f32 1e-05, %v75_v26 }
 0x154   :  { %1024 = vrsqrt.f32 %v77_v28 }
 0x15a   :  { %v1023_v33 = vpop.eup %1022 }
 0x15b   :  { %v80_v34 = vmul.f32 %v1023_v33, %v64_v6 }
 0x15d   :  { %v86_v36 = vmul.f32 %v85_v32, %v80_v34 }
 0x15e   :  { %v1025_v37 = vpop.eup %1024 }
 0x15f   :  { %v81_v38 = vmul.f32 %v1025_v37, %v65_v10  ;;  %v92_v39 = vadd.f32 %v91_v35, %v86_v36 }
 0x161   :  { %v87_v40 = vmul.f32 %v85_v32, %v81_v38  ;;  %879 = vmatprep.mubr.msk.f32.mxu0 %vm54_vm0, %v92_v39 }
 0x163   :  { %v93_v41 = vadd.f32 %v91_v35, %v87_v40 }
 0x165   :  { %880 = vmatmul.mubr.msk.f32.vlgmr.msra.gmra.mrb[0].mxu0 %vm54_vm0, %v93_v41 }
 0x238   :  { %v881_v44 = vpop.f32.mrb[0].mxu0 }
 0x239   :  { %v176_v45 = vadd.f32 %v881_v44, %v97_v43  ;;  %v170_v46 = vpop.f32.mrb[1].mxu0 }
 0x23a   :  { %v171_v47 = vadd.f32 %v170_v46, %v97_v43 }
 0x23b   :  { %183 = vrot.lane.b32.xlu1 %v176_v45, %s1124_s2 }
 0x23c   :  { %181 = vrot.lane.b32.xlu0 %v171_v47, %s1124_s2  ;;  %890 = vmatprep.mubr.msk.f32.mxu1 %vm193_vm1, %v171_v47  ;;  %v992_v48 = vpack.i.bf16 %v176_v45, %v171_v47 }
 0x23f   :  { %993 = vrot.lane.b32.xlu1 %v992_v48, %s1125_s13 }
 0x240   :  { %303 = vrot.lane.b32.xlu0 %v46_v58, %s1125_s13 }
 0x244   :  { %307 = vrot.lane.b32.xlu0 %v50_v61, %s1125_s13 }
 0x2ad   :  { %v184_v49 = vpop.permute.xlu1 %183 }
 0x2ae   :  { %v182_v50 = vpop.permute.xlu0 %181 }
 0x2af   :  { %v997_v51 = vpack.i.bf16 %v184_v49, %v182_v50 }
 0x2b1   :  { %v994_v52 = vpop.permute.xlu1 %993  ;;  %998 = vrot.lane.b32.xlu1 %v997_v51, %s1125_s13 }
 0x2b2   :  { %v996_v53 = vunpack.i.h.bf16 %v994_v52  ;;  %v995_v54 = vunpack.i.l.bf16 %v994_v52  ;;  %v304_v9 = vpop.permute.xlu0 %303 }
 0x2b4   :  { %v943_v56 = vpack.c.bf16 %v996_v53, %v995_v54 }
 0x2b5   :  { %305 = vrot.lane.b32.xlu1 %v48_v57, %s1125_s13 }
 0x2b6   :  { %945 = vmatprep.subr.msk.bf16.mxu1 %vm1220_vm2, %v943_v56  ;;  %v308_v26 = vpop.permute.xlu0 %307 }
 0x2b7   :  { %948 = vmatpush3.bf16.xpose.msk.msra.mxu1 %vm1220_vm2, %v943_v56 }
 0x2b9   :  { %309 = vrot.lane.b32.xlu1 %v52_v60, %s1125_s13  ;;  %v1012_v60 = vpack.i.bf16 %v1198_v19, %v1192_v16 }
 0x323   :  { %v999_v63 = vpop.permute.xlu1 %998 }
 0x324   :  { %v1001_v2 = vunpack.i.h.bf16 %v999_v63  ;;  %v1000_v3 = vunpack.i.l.bf16 %v999_v63 }
 0x326   :  { %v949_v4 = vpack.c.bf16 %v1001_v2, %v1000_v3 }
 0x327   :  { %v306_v5 = vpop.permute.xlu1 %305 }
 0x328   :  { %951 = vmatprep.subr.msk.bf16.mxu1 %vm1220_vm2, %v949_v4 }
 0x329   :  { %954 = vmatpush3.bf16.xpose.msk.msra.mxu1 %vm1220_vm2, %v949_v4 }
 0x32a   :  { %972 = vmatprep.subr.bf16.mxu1 %v971_v59 }
 0x32b   :  { %v310_v18 = vpop.permute.xlu1 %309 }
 0x330   :  { %891 = vmatmul.mubr.msk.f32.vlgmr.msra.gmra.mrb[0].mxu1 %vm193_vm1, %v176_v45 }
 0x331   :  { %893 = vmatprep.mubr.msk.f32.mxu1 %vm193_vm1, %v182_v50  ;;  %974 = vmatpush3.bf16.msra.mxu1 %v971_v59 }
 0x332   :  { %976 = vmatprep.subr.bf16.mxu1 %v975_v62 }
 0x334   :  { %894 = vmatmul.mubr.msk.f32.gmra.mrb[2].mxu1 %vm193_vm1, %v184_v49 }
 0x335   :  { %978 = vmatpush3.bf16.msra.mxu1 %v975_v62 }
 0x403   :  { %v892_v6 = vpop.f32.mrb[0].mxu1 }
 0x404   :  { %v296_v7 = vmul.f32 0.25, %v892_v6  ;;  %v276_v8 = vpop.f32.mrb[1].mxu1 }
 0x405   :  { %v295_v10 = vmul.f32 0.25, %v276_v8 }
 0x406   :  { %v316_v11 = vadd.f32 %v306_v5, %v296_v7 }
 0x407   :  { %v315_v12 = vadd.f32 %v304_v9, %v295_v10  ;;  %v895_v13 = vpop.f32.mrb[2].mxu1 }
 0x408   :  { %v298_v20 = vmul.f32 0.25, %v895_v13  ;;  %v286_v21 = vpop.f32.mrb[3].mxu1  ;;  %v322_v22 = vsel %vm54_vm0, %v316_v11, -inf }
 0x409   :  { %v297_v23 = vmul.f32 0.25, %v286_v21  ;;  %323 = vmax.xlane.f32.xlu1 %v322_v22  ;;  %v319_v24 = vsel %vm54_vm0, %v315_v12, -inf }
 0x40a   :  { %v318_v25 = vadd.f32 %v310_v18, %v298_v20  ;;  %320 = vmax.xlane.f32.xlu0 %v319_v24 }
 0x40b   :  { %v317_v29 = vadd.f32 %v308_v26, %v297_v23 }
 0x40c   :  { %v328_v28 = vsel %vm54_vm0, %v318_v25, -inf }
 0x40d   :  { %v325_v31 = vsel %vm54_vm0, %v317_v29, -inf }
 0x40e   :  { %329 = vmax.xlane.f32.xlu0 %v328_v28 }
 0x412   :  { %326 = vmax.xlane.f32.xlu0 %v325_v31 }
 0x41a   :  { %1008 = vrot.lane.b32.xlu1 %v997_v51, %s1126_s14 }
 0x428   :  { %1003 = vrot.lane.b32.xlu0 %v992_v48, %s1126_s14 }
 0x496   :  { %v324_v32 = vpop.xlane.xlu1 %323 }
 0x497   :  { %v332_v33 = vsub.f32 %v316_v11, %v324_v32  ;;  %v321_v34 = vpop.xlane.xlu0 %320 }
 0x498   :  { %v331_v35 = vsub.f32 %v315_v12, %v321_v34 }
 0x499   :  { %v337_v36 = vmul.f32 1.442695, %v332_v33 }
 0x49a   :  { %v335_v37 = vmul.f32 1.442695, %v331_v35  ;;  %v1009_v42 = vpop.permute.xlu1 %1008 }
 0x49b   :  { %1026 = vpow2.f32 %v337_v36  ;;  %v330_v38 = vpop.xlane.xlu0 %329  ;;  %v1011_v45 = vunpack.i.h.bf16 %v1009_v42  ;;  %v1010_v47 = vunpack.i.l.bf16 %v1009_v42 }
 0x49c   :  { %1028 = vpow2.f32 %v335_v37  ;;  %v334_v39 = vsub.f32 %v318_v25, %v330_v38  ;;  %v666_v37 = vsub.s32 4, %v1202_v27 }
 0x49d   :  { %v959_v55 = vpack.c.bf16 %v1011_v45, %v1010_v47 }
 0x49e   :  { %v341_v40 = vmul.f32 1.442695, %v334_v39  ;;  %v667_v38 = vrot.slane %v1208_v30, %v666_v37 }
 0x49f   :  { %v327_v41 = vpop.xlane.xlu0 %326 }
 0x4a0   :  { %1030 = vpow2.f32 %v341_v40  ;;  %v333_v43 = vsub.f32 %v317_v29, %v327_v41 }
 0x4a2   :  { %v339_v44 = vmul.f32 1.442695, %v333_v43 }
 0x4a3   :  { %v1004_v46 = vpop.permute.xlu0 %1003 }
 0x4a4   :  { %1032 = vpow2.f32 %v339_v44  ;;  %v1006_v48 = vunpack.i.h.bf16 %v1004_v46  ;;  %v1005_v49 = vunpack.i.l.bf16 %v1004_v46 }
 0x4a5   :  { %v1027_v50 = vpop.eup %1026 }
 0x4a6   :  { %v1029_v51 = vpop.eup %1028  ;;  %v955_v52 = vpack.c.bf16 %v1006_v48, %v1005_v49  ;;  %v346_v53 = vsel %vm54_vm0, %v1027_v50, 0.0 }
 0x4a7   :  { %347 = vadd.xlane.f32.xlu1 %v346_v53  ;;  %904 = vmatprep.mubr.msk.f32.mxu0 %vm54_vm0, %v1029_v51  ;;  %v343_v54 = vsel %vm54_vm0, %v1029_v51, 0.0 }
 0x4a8   :  { %344 = vadd.xlane.f32.xlu0 %v343_v54  ;;  %956 = vmatprep.subr.bf16.mxu0 %v955_v52 }
 0x4a9   :  { %958 = vmatpush3.bf16.msra.mxu0 %v955_v52 }
 0x4aa   :  { %v1031_v56 = vpop.eup %1030  ;;  %960 = vmatprep.subr.bf16.mxu0 %v959_v55 }
 0x4ab   :  { %v352_v57 = vsel %vm54_vm0, %v1031_v56, 0.0 }
 0x4ac   :  { %353 = vadd.xlane.f32.xlu0 %v352_v57 }
 0x4ad   :  { %962 = vmatpush3.bf16.msra.mxu0 %v959_v55 }
 0x4ae   :  { %v1033_v58 = vpop.eup %1032 }
 0x4af   :  { %v349_v59 = vsel %vm54_vm0, %v1033_v58, 0.0 }
 0x4b0   :  { %350 = vadd.xlane.f32.xlu1 %v349_v59  ;;  %905 = vmatmul.mubr.msk.f32.vlgmr.msra.gmra.mrb[2].mxu0 %vm54_vm0, %v1027_v50 }
 0x4b1   :  { %907 = vmatprep.mubr.msk.f32.mxu0 %vm54_vm0, %v1033_v58 }
 0x4b4   :  { %908 = vmatmul.mubr.msk.f32.gmra.mrb[4].mxu0 %vm54_vm0, %v1031_v56 }
 0x4c1   :  { %1018 = vrot.lane.b32.xlu1 %v1017_v17, %s1127_s15 }
 0x4c2   :  { %1013 = vrot.lane.b32.xlu0 %v1012_v60, %s1127_s15 }
 0x534   :  { %v348_v62 = vpop.xlane.xlu1 %347 }
 0x535   :  { %v345_v61 = vpop.xlane.xlu0 %344  ;;  %1034 = vrcp.f32 %v348_v62 }
 0x536   :  { %1036 = vrcp.f32 %v345_v61 }
 0x539   :  { %v354_v63 = vpop.xlane.xlu0 %353 }
 0x53a   :  { %1038 = vrcp.f32 %v354_v63 }
 0x53d   :  { %v351_v2 = vpop.xlane.xlu1 %350  ;;  %v1014_v3 = vpop.permute.xlu0 %1013 }
 0x53e   :  { %v1016_v4 = vunpack.i.h.bf16 %v1014_v3  ;;  %v1015_v5 = vunpack.i.l.bf16 %v1014_v3  ;;  %1040 = vrcp.f32 %v351_v2 }
 0x53f   :  { %v1035_v14 = vpop.eup %1034 }
 0x540   :  { %v963_v6 = vpack.c.bf16 %v1016_v4, %v1015_v5  ;;  %v1037_v15 = vpop.eup %1036  ;;  %v469_v17 = vmul.f32 %v1035_v14, %v348_v62  ;;  %v704_v62 = vsub.s32 3, %v1202_v27 }
 0x541   :  { %v1019_v7 = vpop.permute.xlu1 %1018  ;;  %v468_v10 = vmul.f32 %v1037_v15, %v345_v61  ;;  %v698_v61 = vsub.s32 2, %v1202_v27 }
 0x542   :  { %964 = vmatprep.subr.bf16.mxu0 %v963_v6  ;;  %v1021_v8 = vunpack.i.h.bf16 %v1019_v7  ;;  %v1020_v9 = vunpack.i.l.bf16 %v1019_v7  ;;  %v473_v12 = vsub.f32 2.0, %v469_v17 }
 0x543   :  { %966 = vmatpush3.bf16.msra.mxu0 %v963_v6  ;;  %v472_v18 = vsub.f32 2.0, %v468_v10  ;;  %v705_v6 = vrot.slane %v1208_v30, %v704_v62 }
 0x544   :  { %v967_v16 = vpack.c.bf16 %v1021_v8, %v1020_v9  ;;  %v1039_v19 = vpop.eup %1038  ;;  %v477_v22 = vmul.f32 %v1035_v14, %v473_v12  ;;  %v710_v14 = vsub.s32 5, %v1202_v27 }
 0x545   :  { %v471_v13 = vmul.f32 %v1039_v19, %v354_v63  ;;  %v476_v25 = vmul.f32 %v1037_v15, %v472_v18  ;;  %v699_v63 = vrot.slane %v1208_v30, %v698_v61 }
 0x546   :  { %968 = vmatprep.subr.bf16.mxu0 %v967_v16  ;;  %v711_v15 = vrot.slane %v1208_v30, %v710_v14 }
 0x547   :  { %v475_v21 = vsub.f32 2.0, %v471_v13 }
 0x548   :  { %v1041_v11 = vpop.eup %1040 }
 0x549   :  { %v470_v20 = vmul.f32 %v1041_v11, %v351_v2  ;;  %v479_v31 = vmul.f32 %v1039_v19, %v475_v21 }
 0x54b   :  { %v474_v23 = vsub.f32 2.0, %v470_v20 }
 0x54d   :  { %v478_v33 = vmul.f32 %v1041_v11, %v474_v23 }
 0x583   :  { %v906_v24 = vpop.f32.mrb[2].mxu0 }
 0x584   :  { %v481_v26 = vmul.f32 %v906_v24, %v477_v22  ;;  %v445_v28 = vpop.f32.mrb[3].mxu0 }
 0x585   :  { %v480_v29 = vmul.f32 %v476_v25, %v445_v28 }
 0x587   :  { %v909_v32 = vpop.f32.mrb[4].mxu0 }
 0x588   :  { %v483_v34 = vmul.f32 %v909_v32, %v479_v31  ;;  %v455_v35 = vpop.f32.mrb[5].mxu0 }
 0x589   :  { %v482_v36 = vmul.f32 %v478_v33, %v455_v35 }
 0x58b   :  { %914 = vmatprep.mubr.msk.f32.mxu0 %vm193_vm1, %v482_v36 }
 0x58c   :  { %915 = vmatmul.mubr.msk.f32.vlgmr.msra.gmra.mrb[6].mxu0 %vm193_vm1, %v483_v34 }
 0x58d   :  { %970 = vmatpush3.bf16.msra.mxu0 %v967_v16  ;;  %921 = vmatprep.mubr.msk.f32.mxu0 %vm193_vm1, %v480_v29 }
 0x594   :  { %922 = vmatmul.mubr.msk.f32.vlgmr.msra.gmra.mrb[6].mxu0 %vm193_vm1, %v481_v26 }
 0x667   :  { %v923_v39 = vpop.f32.mrb[6].mxu0 }
 0x668   :  { %v663_v40 = vadd.f32 %v923_v39, %v1178_v1  ;;  %v653_v41 = vpop.f32.mrb[7].mxu0 }
 0x669   :  { %v662_v42 = vadd.f32 %v653_v41, %v1176_v0 }
 0x66a   :  { %v669_v43 = vadd.f32 %v667_v38, %v663_v40 }
 0x66b   :  { %v668_v44 = vadd.f32 %v667_v38, %v662_v42 }
 0x66c   :  { %v673_v45 = vsel %vm54_vm0, %v669_v43, 0.0 }
 0x66d   :  { %674 = vadd.xlane.f32.xlu0 %v673_v45  ;;  %v670_v46 = vsel %vm54_vm0, %v668_v44, 0.0 }
 0x66e   :  { %671 = vadd.xlane.f32.xlu1 %v670_v46 }
 0x6fa   :  { %v675_v47 = vpop.xlane.xlu0 %674 }
 0x6fb   :  { %v677_v48 = vmul.f32 0.03125, %v675_v47  ;;  %v672_v49 = vpop.xlane.xlu1 %671 }
 0x6fc   :  { %v676_v50 = vmul.f32 0.03125, %v672_v49 }
 0x6fd   :  { %v679_v51 = vsub.f32 %v669_v43, %v677_v48 }
 0x6fe   :  { %v678_v52 = vsub.f32 %v668_v44, %v676_v50 }
 0x6ff   :  { %v681_v53 = vmul.f32 %v679_v51, %v679_v51 }
 0x700   :  { %v680_v54 = vmul.f32 %v678_v52, %v678_v52 }
 0x701   :  { %v685_v1 = vsel %vm54_vm0, %v681_v53, 0.0 }
 0x702   :  { %686 = vadd.xlane.f32.xlu1 %v685_v1  ;;  %v682_v0 = vsel %vm54_vm0, %v680_v54, 0.0 }
 0x703   :  { %683 = vadd.xlane.f32.xlu0 %v682_v0 }
 0x78f   :  { %v687_v55 = vpop.xlane.xlu1 %686 }
 0x790   :  { %v689_v56 = vmul.f32 0.03125, %v687_v55  ;;  %v684_v57 = vpop.xlane.xlu0 %683 }
 0x791   :  { %v688_v58 = vmul.f32 0.03125, %v684_v57 }
 0x792   :  { %v691_v59 = vadd.f32 1e-05, %v689_v56 }
 0x793   :  { %v690_v60 = vadd.f32 1e-05, %v688_v58 }
 0x794   :  { %1042 = vrsqrt.f32 %v691_v59 }
 0x795   :  { %1044 = vrsqrt.f32 %v690_v60 }
 0x79e   :  { %v1043_v2 = vpop.eup %1042 }
 0x79f   :  { %v1045_v3 = vpop.eup %1044  ;;  %v695_v4 = vmul.f32 %v1043_v2, %v679_v51 }
 0x7a0   :  { %v694_v5 = vmul.f32 %v1045_v3, %v678_v52 }
 0x7a1   :  { %v701_v7 = vmul.f32 %v699_v63, %v695_v4 }
 0x7a2   :  { %v700_v8 = vmul.f32 %v699_v63, %v694_v5 }
 0x7a3   :  { %v707_v16 = vadd.f32 %v705_v6, %v701_v7 }
 0x7a4   :  { %v706_v9 = vadd.f32 %v705_v6, %v700_v8 }
 0x7a6   :  { %932 = vmatprep.mubr.msk.f32.mxu1 %vm54_vm0, %v706_v9 }
 0x7a7   :  { %933 = vmatmul.mubr.msk.f32.vlgmr.msra.gmra.mrb[4].mxu1 %vm54_vm0, %v707_v16 }
 0x87a   :  { %v934_v17 = vpop.f32.mrb[4].mxu1 }
 0x87b   :  { %v790_v19 = vadd.f32 %v934_v17, %v711_v15  ;;  %v784_v10 = vpop.f32.mrb[5].mxu1 }
 0x87c   :  { %v785_v11 = vadd.f32 %v784_v10, %v711_v15 }
 0x87d   :  { %v794_v12 = vadd.f32 %v790_v19, %v669_v43 }
 0x87e   :  { %v793_v13 = vadd.f32 %v785_v11, %v668_v44 }
 0x87f   :  { %796 = vst.msk [vmem:[#allocation7 + $0x8] sm:$0xff] %vm54_vm0, %v794_v12 }
 0x880   :  { %795 = vst.msk [vmem:[#allocation7] sm:$0xff] %vm54_vm0, %v793_v13 }
 0x881   :  { %1101 = shalt.err (!%p1098_p6)
}
 0x882   :  { %s1102_s21 = scalar_lea.hbm %s1292_s3, 256 }
 0x883   :  { %p1103_p7 = scmp.ne.s32.totalorder %s1292_s3, %s1102_s21  ;;  %p1106_p8 = scmp.lt.u32.totalorder %s1102_s21, %s1292_s3 }
 0x885   :  { %p1108_p9 = pnand %p1106_p8, %p1103_p7 }
 0x887   :  { %1111 = shalt.err (!%p1108_p9)
}
 0x888   :  { %808 = dma.vmem_to_hbm [thread:$0]  %s803_s17, 256, %s1292_s3, [#allocation4], %s1119_s22, %s1119_s22, %s1120_s23  }
 0x889   :  { %1116 = dma.done.wait [#allocation4], 256  }
 0x88a   :  { %1117 = vsyncadd [#allocation4], 4294967040 }
 0x88b   :  { %812 = vsyncpa [#allocation3], 1 }
 0x88c   :  { %813 = vsyncpa [#allocation6], 1 }
 0x88d   :  { %814 = vsyncpa [#allocation4], 1 }

</bundles_post_ra>
